<compile_context>
chip_gen: v5e
topology: v5e:2x2
jax: 0.10.0
libtpu: 0.0.40
codegen_flags: <defaults>
</compile_context>

<pallas_src>
import jax
import jax.numpy as jnp
import numpy as np
from jax import lax
from jax.experimental import pallas as pl
from jax.experimental.pallas import tpu as pltpu


# --------------------------------------------------------------------------
# tiling helpers
# --------------------------------------------------------------------------
def _pick_row_tile(m, candidates=(512, 256, 128)):
    for tm in candidates:
        if m % tm == 0:
            return tm
    return m


def _pick_lane_tile(n, max_tile=4096):
    if n <= max_tile:
        return n
    for tl in (4096, 2048, 1024, 512, 256, 128):
        if n % tl == 0:
            return tl
    return n


# --------------------------------------------------------------------------
# Kernel 1: fused linear projections  y = x @ W_all + b_all  (row-tiled)
# --------------------------------------------------------------------------
def _linear_kernel(x_ref, w_ref, b_ref, o_ref):
    o_ref[...] = (
        jnp.dot(x_ref[...], w_ref[...], preferred_element_type=jnp.float32)
        + b_ref[...]
    )


def fused_projections(x2d, w_all, b_all):
    M, K = x2d.shape
    N = w_all.shape[1]
    TM = _pick_row_tile(M)
    return pl.pallas_call(
        _linear_kernel,
        out_shape=jax.ShapeDtypeStruct((M, N), jnp.float32),
        grid_spec=pl.GridSpec(
            grid=(M // TM,),
            in_specs=[
                pl.BlockSpec((TM, K), lambda i: (i, 0)),
                pl.BlockSpec((K, N), lambda i: (0, 0)),
                pl.BlockSpec((1, N), lambda i: (0, 0)),
            ],
            out_specs=pl.BlockSpec((TM, N), lambda i: (i, 0)),
        ),
        compiler_params=pltpu.CompilerParams(dimension_semantics=("parallel",)),
    )(x2d, w_all, b_all)


# --------------------------------------------------------------------------
# Kernel 2 (stage 1 of the triaffine):
#   CW[t, m, (p,o,q)] = sum_r C[t, m, r] * Wprep[t][r, (p,o,q)]
# rows m = flattened (batch, seq) -> large lane-dense MXU matmuls per tile.
# --------------------------------------------------------------------------
def _cw_kernel(c_ref, w_ref, o_ref):
    o_ref[0] = jnp.dot(c_ref[0], w_ref[0], preferred_element_type=jnp.float32)


def contract_weight_with_c(Cs2, Ws):
    # Cs2: (T, M, d)   Ws: (T, d, L) with L = d * n_out * d
    T, M, d = Cs2.shape
    L = Ws.shape[2]
    TM = _pick_row_tile(M)
    TL = _pick_lane_tile(L)
    return pl.pallas_call(
        _cw_kernel,
        out_shape=jax.ShapeDtypeStruct((T, M, L), jnp.float32),
        grid_spec=pl.GridSpec(
            grid=(T, M // TM, L // TL),
            in_specs=[
                pl.BlockSpec((1, TM, d), lambda t, m, l: (t, m, 0)),
                pl.BlockSpec((1, d, TL), lambda t, m, l: (t, 0, l)),
            ],
            out_specs=pl.BlockSpec((1, TM, TL), lambda t, m, l: (t, m, l)),
        ),
        compiler_params=pltpu.CompilerParams(
            dimension_semantics=("parallel", "parallel", "parallel")),
    )(Cs2, Ws)


# --------------------------------------------------------------------------
# Kernel 3 (stage 2 of the triaffine): per (t, b, k)
#   AM  = A @ CW_k                       (one matmul, batched over n_out)
#   S_o = AM[:, o*d:(o+1)*d] @ B^T       (n_out small matmuls)
#   mask i<=j (zero elsewhere) + log_softmax over n_out, store (o, i, j) faces
# --------------------------------------------------------------------------
def _make_triaffine_kernel(seq_len, d, n_out):
    def kernel(a_ref, b_ref, cw_ref, o_ref):
        A = a_ref[0, 0]            # (seq, d)        -> index i
        B = b_ref[0, 0]            # (seq, d)        -> index j
        CWk = cw_ref[0, 0, 0]      # (d, n_out*d)    rows p, lanes (o, q)

        # batched over o: AM[i, (o,q)] = sum_p A[i,p] * CW_k[p, (o,q)]
        AM = jnp.dot(A, CWk, preferred_element_type=jnp.float32)  # (seq, n_out*d)

        ii = lax.broadcasted_iota(jnp.int32, (seq_len, seq_len), 0)
        jj = lax.broadcasted_iota(jnp.int32, (seq_len, seq_len), 1)
        keep = ii <= jj

        scores = []
        for o in range(n_out):                         # n_out is small & fixed
            AM_o = AM[:, o * d:(o + 1) * d]            # (seq, d) static slice
            S_o = lax.dot_general(AM_o, B, (((1,), (1,)), ((), ())),
                                  preferred_element_type=jnp.float32)  # (seq, seq)
            scores.append(jnp.where(keep, S_o, 0.0))

        # log_softmax over the n_out axis (held as a small Python list of tiles)
        m = scores[0]
        for s in scores[1:]:
            m = jnp.maximum(m, s)
        denom = jnp.exp(scores[0] - m)
        for s in scores[1:]:
            denom = denom + jnp.exp(s - m)
        lse = jnp.log(denom) + m
        for o in range(n_out):
            o_ref[0, 0, 0, o] = scores[o] - lse        # contiguous (seq, seq) store

    return kernel


def triaffine_log_scores(As, Bs, CW, n_out):
    # As, Bs: (T, bsz, seq, d);  CW: (T, bsz, seq, d, n_out*d)
    T, bsz, seq, d = As.shape
    kernel = _make_triaffine_kernel(seq, d, n_out)
    return pl.pallas_call(
        kernel,
        out_shape=jax.ShapeDtypeStruct((T, bsz, seq, n_out, seq, seq), jnp.float32),
        grid_spec=pl.GridSpec(
            grid=(T, bsz, seq),
            in_specs=[
                pl.BlockSpec((1, 1, seq, d), lambda t, b, k: (t, b, 0, 0)),
                pl.BlockSpec((1, 1, seq, d), lambda t, b, k: (t, b, 0, 0)),
                pl.BlockSpec((1, 1, 1, d, n_out * d),
                             lambda t, b, k: (t, b, k, 0, 0)),
            ],
            out_specs=pl.BlockSpec((1, 1, 1, n_out, seq, seq),
                                   lambda t, b, k: (t, b, k, 0, 0, 0)),
        ),
        compiler_params=pltpu.CompilerParams(
            dimension_semantics=("parallel", "parallel", "parallel")),
    )(As, Bs, CW)


# --------------------------------------------------------------------------
# Full forward pass
# --------------------------------------------------------------------------
def _prep_weight(W):
    # W: (n_out, d, d, d) laid out (o, p, q, r)  ->  (r, p, o, q)  ->  (d, d*n_out*d)
    n_out, d = W.shape[0], W.shape[1]
    return jnp.transpose(W, (3, 1, 0, 2)).reshape(d, d * n_out * d)


@jax.jit
def second_order_scorer_forward(x, params):
    bsz, seq, din = x.shape
    d = params["W_sh"].shape[0]
    n_out = params["W_shstoh"].shape[0]

    # PyTorch Linear: y = x @ W.T + b ; fuse the four used projections.
    w_all = jnp.concatenate(
        [params["W_sh"].T, params["W_st"].T, params["W_oh"].T, params["W_ot"].T],
        axis=1)
    b_all = jnp.concatenate(
        [params["b_sh"], params["b_st"], params["b_oh"], params["b_ot"]])[None, :]

    proj = fused_projections(x.reshape(bsz * seq, din), w_all, b_all)
    proj = proj.reshape(bsz, seq, 4, d)
    sh, st, rel_oh, rel_ot = (proj[:, :, 0, :], proj[:, :, 1, :],
                              proj[:, :, 2, :], proj[:, :, 3, :])
    # dropout: identity (eval mode)

    # Both triaffines share the convention
    #   out[t,b,i,j,k,o] = sum_{p,q,r} A[i,p] B[j,q] C[k,r] Weff[o,p,q,r]
    # with mask i<=j:
    #   t=0 (shstoh): A=st,     B=rel_oh, C=sh, Weff = W_shstoh
    #   t=1 (shstot): A=rel_ot, B=sh,     C=st, Weff = W_shstot with q/r swapped
    # which makes t=0 output (b, st, oh, sh, o) and t=1 output (b, ot, sh, st, o),
    # exactly the PyTorch layouts.
    As = jnp.stack([st, rel_ot], axis=0)
    Bs = jnp.stack([rel_oh, sh], axis=0)
    Cs = jnp.stack([sh, st], axis=0)
    Ws = jnp.stack(
        [_prep_weight(params["W_shstoh"]),
         _prep_weight(jnp.transpose(params["W_shstot"], (0, 1, 3, 2)))], axis=0)

    # Stage 1: dominant contraction, big lane-dense MXU matmuls over flattened rows.
    Cs2 = Cs.reshape(2, bsz * seq, d)
    cw = contract_weight_with_c(Cs2, Ws)                   # (2, b*seq, d*n_out*d)
    cw = cw.reshape(2, bsz, seq, d, n_out * d)             # free reshape (HBM view)

    # Stage 2: per (t, b, k) finish the sandwich, mask + log_softmax over n_out.
    raw = triaffine_log_scores(As, Bs, cw, n_out)          # (2, b, k, o, i, j)

    # n_out must end up minor-most; a single XLA permute restores PyTorch layout.
    out = jnp.transpose(raw, (0, 1, 4, 5, 2, 3))           # (2, b, i, j, k, o)
    return out[0], out[1]


# --------------------------------------------------------------------------
# Pure-JAX reference (mirrors the PyTorch forward semantics exactly)
# --------------------------------------------------------------------------
def reference_forward(x, params):
    def linear(v, W, b):
        return v @ W.T + b

    sh = linear(x, params["W_sh"], params["b_sh"])
    st = linear(x, params["W_st"], params["b_st"])
    rel_oh = linear(x, params["W_oh"], params["b_oh"])
    rel_ot = linear(x, params["W_ot"], params["b_ot"])

    def tri(A, B, C, W):
        return jnp.einsum("bip,bjq,bkr,opqr->bijko", A, B, C, W)

    n = x.shape[1]
    tri_mask = jnp.arange(n)[:, None] <= jnp.arange(n)[None, :]

    s1 = tri(st, rel_oh, sh, params["W_shstoh"])          # (b, st, oh, sh, o)
    s1 = jnp.where(tri_mask[None, :, :, None, None], s1, 0.0)
    shstoh = jax.nn.log_softmax(s1, axis=-1)

    s2 = tri(rel_ot, st, sh, params["W_shstot"])          # (b, ot, st, sh, o)
    s2 = jnp.transpose(s2, (0, 1, 3, 2, 4))               # (b, ot, sh, st, o)
    s2 = jnp.where(tri_mask[None, :, :, None, None], s2, 0.0)
    shstot = jax.nn.log_softmax(s2, axis=-1)
    return shstoh, shstot


# --------------------------------------------------------------------------
if __name__ == "__main__":
    bsz, seq, input_dim, triaffine_dim, n_out = 2, 8, 32, 32, 4

    key = jax.random.PRNGKey(0)
    ks = jax.random.split(key, 11)

    def lin_init(kw, kb, out_dim, in_dim):
        bound = 1.0 / np.sqrt(in_dim)
        W = jax.random.uniform(kw, (out_dim, in_dim), jnp.float32, -bound, bound)
        b = jax.random.uniform(kb, (out_dim,), jnp.float32, -bound, bound)
        return W, b

    params = {}
    for idx, name in enumerate(["sh", "st", "oh", "ot"]):
        W, b = lin_init(ks[2 * idx], ks[2 * idx + 1], triaffine_dim, input_dim)
        params[f"W_{name}"] = W
        params[f"b_{name}"] = b
    params["W_shstoh"] = 0.1 * jax.random.normal(
        ks[8], (n_out, triaffine_dim, triaffine_dim, triaffine_dim), jnp.float32)
    params["W_shstot"] = 0.1 * jax.random.normal(
        ks[9], (n_out, triaffine_dim, triaffine_dim, triaffine_dim), jnp.float32)

    x = jax.random.normal(ks[10], (bsz, seq, input_dim), jnp.float32)

    out1, out2 = second_order_scorer_forward(x, params)
    jax.block_until_ready((out1, out2))

    ref1, ref2 = reference_forward(x, params)
    assert out1.shape == (bsz, seq, seq, seq, n_out)
    assert out2.shape == (bsz, seq, seq, seq, n_out)
    np.testing.assert_allclose(np.asarray(out1), np.asarray(ref1), rtol=2e-3, atol=2e-3)
    np.testing.assert_allclose(np.asarray(out2), np.asarray(ref2), rtol=2e-3, atol=2e-3)

    print("KERNEL_OK")
</pallas_src>

<mosaic_0001>
module attributes {stable_mosaic.version = 11 : i64} {
  func.func @_linear_kernel(%arg0: i32, %arg1: memref<16x32xf32, #tpu.memory_space<vmem>>, %arg2: memref<32x128xf32, #tpu.memory_space<vmem>>, %arg3: memref<1x128xf32, #tpu.memory_space<vmem>>, %arg4: memref<16x128xf32, #tpu.memory_space<vmem>>) attributes {dimension_semantics = [#tpu.dimension_semantics<parallel>], iteration_bounds = array<i64: 1>, scalar_prefetch = 0 : i64, scratch_operands = 0 : i64, tpu.core_type = #tpu.core_type<tc>, window_params = [{transform_indices = @transform_0, window_bounds = array<i64: 16, 32>}, {pipeline_mode = #tpu.pipeline_mode<synchronous>, transform_indices = @transform_1, window_bounds = array<i64: 32, 128>}, {pipeline_mode = #tpu.pipeline_mode<synchronous>, transform_indices = @transform_2, window_bounds = array<i64: 1, 128>}, {transform_indices = @transform_3, window_bounds = array<i64: 16, 128>}]} {
    %c0 = arith.constant 0 : index
    %c0_0 = arith.constant 0 : index
    %0 = vector.load %arg1[%c0, %c0_0] : memref<16x32xf32, #tpu.memory_space<vmem>>, vector<16x32xf32>
    %c0_1 = arith.constant 0 : index
    %c0_2 = arith.constant 0 : index
    %1 = vector.load %arg2[%c0_1, %c0_2] : memref<32x128xf32, #tpu.memory_space<vmem>>, vector<32x128xf32>
    %cst = arith.constant dense<0.000000e+00> : vector<16x128xf32>
    %2 = tpu.matmul %0, %1, %cst {dimension_numbers = #tpu.dot_dimension_numbers<[1], [0], [0], [1], [0, 0, 1, 1], [], []>} : vector<16x32xf32>, vector<32x128xf32>, vector<16x128xf32> -> vector<16x128xf32>
    %c0_3 = arith.constant 0 : index
    %c0_4 = arith.constant 0 : index
    %3 = vector.load %arg3[%c0_3, %c0_4] : memref<1x128xf32, #tpu.memory_space<vmem>>, vector<1x128xf32>
    %4 = vector.broadcast %3 : vector<1x128xf32> to vector<16x128xf32>
    %5 = arith.addf %2, %4 : vector<16x128xf32>
    %c0_5 = arith.constant 0 : index
    %c0_6 = arith.constant 0 : index
    %6 = vector.load %arg4[%c0_5, %c0_6] : memref<16x128xf32, #tpu.memory_space<vmem>>, vector<16x128xf32>
    tpu.vector_store %arg4[%c0_5, %c0_6], %5 {strides = array<i32>} : memref<16x128xf32, #tpu.memory_space<vmem>>, vector<16x128xf32>,
    return
  }
  func.func @transform_0(%arg0: i32) -> (i32, i32) {
    %c0_i32 = arith.constant 0 : i32
    %c0_i32_0 = arith.constant 0 : i32
    return %arg0, %c0_i32 : i32, i32
  }
  func.func @transform_1(%arg0: i32) -> (i32, i32) {
    %c0_i32 = arith.constant 0 : i32
    %c0_i32_0 = arith.constant 0 : i32
    %c0_i32_1 = arith.constant 0 : i32
    return %c0_i32, %c0_i32_0 : i32, i32
  }
  func.func @transform_2(%arg0: i32) -> (i32, i32) {
    %c0_i32 = arith.constant 0 : i32
    %c0_i32_0 = arith.constant 0 : i32
    %c0_i32_1 = arith.constant 0 : i32
    return %c0_i32, %c0_i32_0 : i32, i32
  }
  func.func @transform_3(%arg0: i32) -> (i32, i32) {
    %c0_i32 = arith.constant 0 : i32
    %c0_i32_0 = arith.constant 0 : i32
    return %arg0, %c0_i32 : i32, i32
  }
}

module attributes {stable_mosaic.version = 11 : i64} {
  func.func @_cw_kernel(%arg0: i32, %arg1: i32, %arg2: i32, %arg3: memref<1x16x32xf32, #tpu.memory_space<vmem>>, %arg4: memref<1x32x4096xf32, #tpu.memory_space<vmem>>, %arg5: memref<1x16x4096xf32, #tpu.memory_space<vmem>>) attributes {dimension_semantics = [#tpu.dimension_semantics<parallel>, #tpu.dimension_semantics<parallel>, #tpu.dimension_semantics<parallel>], iteration_bounds = array<i64: 2, 1, 1>, scalar_prefetch = 0 : i64, scratch_operands = 0 : i64, tpu.core_type = #tpu.core_type<tc>, window_params = [{transform_indices = @transform_0, window_bounds = array<i64: 1, 16, 32>}, {transform_indices = @transform_1, window_bounds = array<i64: 1, 32, 4096>}, {transform_indices = @transform_2, window_bounds = array<i64: 1, 16, 4096>}]} {
    %c0 = arith.constant 0 : index
    %c0_0 = arith.constant 0 : index
    %c0_1 = arith.constant 0 : index
    %0 = vector.load %arg3[%c0, %c0_0, %c0_1] : memref<1x16x32xf32, #tpu.memory_space<vmem>>, vector<1x16x32xf32>
    %1 = vector.shape_cast %0 : vector<1x16x32xf32> to vector<16x32xf32>
    %c0_2 = arith.constant 0 : index
    %c0_3 = arith.constant 0 : index
    %c0_4 = arith.constant 0 : index
    %2 = vector.load %arg4[%c0_2, %c0_3, %c0_4] : memref<1x32x4096xf32, #tpu.memory_space<vmem>>, vector<1x32x4096xf32>
    %3 = vector.shape_cast %2 : vector<1x32x4096xf32> to vector<32x4096xf32>
    %cst = arith.constant dense<0.000000e+00> : vector<16x4096xf32>
    %4 = tpu.matmul %1, %3, %cst {dimension_numbers = #tpu.dot_dimension_numbers<[1], [0], [0], [1], [0, 0, 1, 1], [], []>} : vector<16x32xf32>, vector<32x4096xf32>, vector<16x4096xf32> -> vector<16x4096xf32>
    %c0_5 = arith.constant 0 : index
    %c0_6 = arith.constant 0 : index
    %c0_7 = arith.constant 0 : index
    %5 = vector.load %arg5[%c0_5, %c0_6, %c0_7] : memref<1x16x4096xf32, #tpu.memory_space<vmem>>, vector<1x16x4096xf32>
    %6 = vector.shape_cast %5 : vector<1x16x4096xf32> to vector<16x4096xf32>
    %7 = vector.shape_cast %4 : vector<16x4096xf32> to vector<1x16x4096xf32>
    tpu.vector_store %arg5[%c0_5, %c0_6, %c0_7], %7 {strides = array<i32>} : memref<1x16x4096xf32, #tpu.memory_space<vmem>>, vector<1x16x4096xf32>,
    return
  }
  func.func @transform_0(%arg0: i32, %arg1: i32, %arg2: i32) -> (i32, i32, i32) {
    %c0_i32 = arith.constant 0 : i32
    %c0_i32_0 = arith.constant 0 : i32
    return %arg0, %arg1, %c0_i32 : i32, i32, i32
  }
  func.func @transform_1(%arg0: i32, %arg1: i32, %arg2: i32) -> (i32, i32, i32) {
    %c0_i32 = arith.constant 0 : i32
    %c0_i32_0 = arith.constant 0 : i32
    return %arg0, %c0_i32, %arg2 : i32, i32, i32
  }
  func.func @transform_2(%arg0: i32, %arg1: i32, %arg2: i32) -> (i32, i32, i32) {
    %c0_i32 = arith.constant 0 : i32
    return %arg0, %arg1, %arg2 : i32, i32, i32
  }
}

module attributes {stable_mosaic.version = 11 : i64} {
  func.func @kernel(%arg0: i32, %arg1: i32, %arg2: i32, %arg3: memref<1x1x8x32xf32, #tpu.memory_space<vmem>>, %arg4: memref<1x1x8x32xf32, #tpu.memory_space<vmem>>, %arg5: memref<1x1x1x32x128xf32, #tpu.memory_space<vmem>>, %arg6: memref<1x1x1x4x8x8xf32, #tpu.memory_space<vmem>>) attributes {dimension_semantics = [#tpu.dimension_semantics<parallel>, #tpu.dimension_semantics<parallel>, #tpu.dimension_semantics<parallel>], iteration_bounds = array<i64: 2, 2, 8>, scalar_prefetch = 0 : i64, scratch_operands = 0 : i64, tpu.core_type = #tpu.core_type<tc>, window_params = [{transform_indices = @transform_0, window_bounds = array<i64: 1, 1, 8, 32>}, {transform_indices = @transform_1, window_bounds = array<i64: 1, 1, 8, 32>}, {transform_indices = @transform_2, window_bounds = array<i64: 1, 1, 1, 32, 128>}, {transform_indices = @transform_3, window_bounds = array<i64: 1, 1, 1, 4, 8, 8>}]} {
    %c0 = arith.constant 0 : index
    %c0_0 = arith.constant 0 : index
    %c0_1 = arith.constant 0 : index
    %c0_2 = arith.constant 0 : index
    %0 = vector.load %arg3[%c0, %c0_0, %c0_1, %c0_2] : memref<1x1x8x32xf32, #tpu.memory_space<vmem>>, vector<1x1x8x32xf32>
    %1 = vector.shape_cast %0 : vector<1x1x8x32xf32> to vector<8x32xf32>
    %c0_3 = arith.constant 0 : index
    %c0_4 = arith.constant 0 : index
    %c0_5 = arith.constant 0 : index
    %c0_6 = arith.constant 0 : index
    %2 = vector.load %arg4[%c0_3, %c0_4, %c0_5, %c0_6] : memref<1x1x8x32xf32, #tpu.memory_space<vmem>>, vector<1x1x8x32xf32>
    %3 = vector.shape_cast %2 : vector<1x1x8x32xf32> to vector<8x32xf32>
    %c0_7 = arith.constant 0 : index
    %c0_8 = arith.constant 0 : index
    %c0_9 = arith.constant 0 : index
    %c0_10 = arith.constant 0 : index
    %c0_11 = arith.constant 0 : index
    %4 = vector.load %arg5[%c0_7, %c0_8, %c0_9, %c0_10, %c0_11] : memref<1x1x1x32x128xf32, #tpu.memory_space<vmem>>, vector<1x1x1x32x128xf32>
    %5 = vector.shape_cast %4 : vector<1x1x1x32x128xf32> to vector<32x128xf32>
    %cst = arith.constant dense<0.000000e+00> : vector<8x128xf32>
    %6 = tpu.matmul %1, %5, %cst {dimension_numbers = #tpu.dot_dimension_numbers<[1], [0], [0], [1], [0, 0, 1, 1], [], []>} : vector<8x32xf32>, vector<32x128xf32>, vector<8x128xf32> -> vector<8x128xf32>
    %7 = tpu.iota {dimensions = array<i32: 0>} : vector<8x8xi32>
    %8 = tpu.iota {dimensions = array<i32: 1>} : vector<8x8xi32>
    %9 = arith.cmpi sle, %7, %8 : vector<8x8xi32>
    %10 = vector.extract_strided_slice %6 {offsets = [0, 0], sizes = [8, 32], strides = [1, 1]} : vector<8x128xf32> to vector<8x32xf32>
    %cst_12 = arith.constant dense<0.000000e+00> : vector<8x8xf32>
    %11 = tpu.matmul %10, %3, %cst_12 {dimension_numbers = #tpu.dot_dimension_numbers<[1], [1], [0], [0], [0, 0, 1, 0], [], []>} : vector<8x32xf32>, vector<8x32xf32>, vector<8x8xf32> -> vector<8x8xf32>
    %cst_13 = arith.constant 0.000000e+00 : f32
    %12 = vector.broadcast %cst_13 : f32 to vector<8x8xf32>
    %13 = arith.select %9, %11, %12 : vector<8x8xi1>, vector<8x8xf32>
    %14 = vector.extract_strided_slice %6 {offsets = [0, 32], sizes = [8, 32], strides = [1, 1]} : vector<8x128xf32> to vector<8x32xf32>
    %cst_14 = arith.constant dense<0.000000e+00> : vector<8x8xf32>
    %15 = tpu.matmul %14, %3, %cst_14 {dimension_numbers = #tpu.dot_dimension_numbers<[1], [1], [0], [0], [0, 0, 1, 0], [], []>} : vector<8x32xf32>, vector<8x32xf32>, vector<8x8xf32> -> vector<8x8xf32>
    %cst_15 = arith.constant 0.000000e+00 : f32
    %16 = vector.broadcast %cst_15 : f32 to vector<8x8xf32>
    %17 = arith.select %9, %15, %16 : vector<8x8xi1>, vector<8x8xf32>
    %18 = vector.extract_strided_slice %6 {offsets = [0, 64], sizes = [8, 32], strides = [1, 1]} : vector<8x128xf32> to vector<8x32xf32>
    %cst_16 = arith.constant dense<0.000000e+00> : vector<8x8xf32>
    %19 = tpu.matmul %18, %3, %cst_16 {dimension_numbers = #tpu.dot_dimension_numbers<[1], [1], [0], [0], [0, 0, 1, 0], [], []>} : vector<8x32xf32>, vector<8x32xf32>, vector<8x8xf32> -> vector<8x8xf32>
    %cst_17 = arith.constant 0.000000e+00 : f32
    %20 = vector.broadcast %cst_17 : f32 to vector<8x8xf32>
    %21 = arith.select %9, %19, %20 : vector<8x8xi1>, vector<8x8xf32>
    %22 = vector.extract_strided_slice %6 {offsets = [0, 96], sizes = [8, 32], strides = [1, 1]} : vector<8x128xf32> to vector<8x32xf32>
    %cst_18 = arith.constant dense<0.000000e+00> : vector<8x8xf32>
    %23 = tpu.matmul %22, %3, %cst_18 {dimension_numbers = #tpu.dot_dimension_numbers<[1], [1], [0], [0], [0, 0, 1, 0], [], []>} : vector<8x32xf32>, vector<8x32xf32>, vector<8x8xf32> -> vector<8x8xf32>
    %cst_19 = arith.constant 0.000000e+00 : f32
    %24 = vector.broadcast %cst_19 : f32 to vector<8x8xf32>
    %25 = arith.select %9, %23, %24 : vector<8x8xi1>, vector<8x8xf32>
    %26 = arith.maximumf %13, %17 : vector<8x8xf32>
    %27 = arith.maximumf %26, %21 : vector<8x8xf32>
    %28 = arith.maximumf %27, %25 : vector<8x8xf32>
    %29 = arith.subf %13, %28 : vector<8x8xf32>
    %30 = math.exp %29 : vector<8x8xf32>
    %31 = arith.subf %17, %28 : vector<8x8xf32>
    %32 = math.exp %31 : vector<8x8xf32>
    %33 = arith.addf %30, %32 : vector<8x8xf32>
    %34 = arith.subf %21, %28 : vector<8x8xf32>
    %35 = math.exp %34 : vector<8x8xf32>
    %36 = arith.addf %33, %35 : vector<8x8xf32>
    %37 = arith.subf %25, %28 : vector<8x8xf32>
    %38 = math.exp %37 : vector<8x8xf32>
    %39 = arith.addf %36, %38 : vector<8x8xf32>
    %40 = math.log %39 : vector<8x8xf32>
    %41 = arith.addf %40, %28 : vector<8x8xf32>
    %42 = arith.subf %13, %41 : vector<8x8xf32>
    %c0_20 = arith.constant 0 : index
    %c0_21 = arith.constant 0 : index
    %c0_22 = arith.constant 0 : index
    %c0_23 = arith.constant 0 : index
    %c0_24 = arith.constant 0 : index
    %c0_25 = arith.constant 0 : index
    %43 = vector.load %arg6[%c0_20, %c0_21, %c0_22, %c0_23, %c0_24, %c0_25] : memref<1x1x1x4x8x8xf32, #tpu.memory_space<vmem>>, vector<1x1x1x1x8x8xf32>
    %44 = vector.shape_cast %43 : vector<1x1x1x1x8x8xf32> to vector<8x8xf32>
    %45 = vector.shape_cast %42 : vector<8x8xf32> to vector<1x1x1x1x8x8xf32>
    tpu.vector_store %arg6[%c0_20, %c0_21, %c0_22, %c0_23, %c0_24, %c0_25], %45 {strides = array<i32>} : memref<1x1x1x4x8x8xf32, #tpu.memory_space<vmem>>, vector<1x1x1x1x8x8xf32>,
    %46 = arith.subf %17, %41 : vector<8x8xf32>
    %c0_26 = arith.constant 0 : index
    %c0_27 = arith.constant 0 : index
    %c0_28 = arith.constant 0 : index
    %c1 = arith.constant 1 : index
    %c0_29 = arith.constant 0 : index
    %c0_30 = arith.constant 0 : index
    %47 = vector.load %arg6[%c0_26, %c0_27, %c0_28, %c1, %c0_29, %c0_30] : memref<1x1x1x4x8x8xf32, #tpu.memory_space<vmem>>, vector<1x1x1x1x8x8xf32>
    %48 = vector.shape_cast %47 : vector<1x1x1x1x8x8xf32> to vector<8x8xf32>
    %49 = vector.shape_cast %46 : vector<8x8xf32> to vector<1x1x1x1x8x8xf32>
    tpu.vector_store %arg6[%c0_26, %c0_27, %c0_28, %c1, %c0_29, %c0_30], %49 {strides = array<i32>} : memref<1x1x1x4x8x8xf32, #tpu.memory_space<vmem>>, vector<1x1x1x1x8x8xf32>,
    %50 = arith.subf %21, %41 : vector<8x8xf32>
    %c0_31 = arith.constant 0 : index
    %c0_32 = arith.constant 0 : index
    %c0_33 = arith.constant 0 : index
    %c2 = arith.constant 2 : index
    %c0_34 = arith.constant 0 : index
    %c0_35 = arith.constant 0 : index
    %51 = vector.load %arg6[%c0_31, %c0_32, %c0_33, %c2, %c0_34, %c0_35] : memref<1x1x1x4x8x8xf32, #tpu.memory_space<vmem>>, vector<1x1x1x1x8x8xf32>
    %52 = vector.shape_cast %51 : vector<1x1x1x1x8x8xf32> to vector<8x8xf32>
    %53 = vector.shape_cast %50 : vector<8x8xf32> to vector<1x1x1x1x8x8xf32>
    tpu.vector_store %arg6[%c0_31, %c0_32, %c0_33, %c2, %c0_34, %c0_35], %53 {strides = array<i32>} : memref<1x1x1x4x8x8xf32, #tpu.memory_space<vmem>>, vector<1x1x1x1x8x8xf32>,
    %54 = arith.subf %25, %41 : vector<8x8xf32>
    %c0_36 = arith.constant 0 : index
    %c0_37 = arith.constant 0 : index
    %c0_38 = arith.constant 0 : index
    %c3 = arith.constant 3 : index
    %c0_39 = arith.constant 0 : index
    %c0_40 = arith.constant 0 : index
    %55 = vector.load %arg6[%c0_36, %c0_37, %c0_38, %c3, %c0_39, %c0_40] : memref<1x1x1x4x8x8xf32, #tpu.memory_space<vmem>>, vector<1x1x1x1x8x8xf32>
    %56 = vector.shape_cast %55 : vector<1x1x1x1x8x8xf32> to vector<8x8xf32>
    %57 = vector.shape_cast %54 : vector<8x8xf32> to vector<1x1x1x1x8x8xf32>
    tpu.vector_store %arg6[%c0_36, %c0_37, %c0_38, %c3, %c0_39, %c0_40], %57 {strides = array<i32>} : memref<1x1x1x4x8x8xf32, #tpu.memory_space<vmem>>, vector<1x1x1x1x8x8xf32>,
    return
  }
  func.func @transform_0(%arg0: i32, %arg1: i32, %arg2: i32) -> (i32, i32, i32, i32) {
    %c0_i32 = arith.constant 0 : i32
    %c0_i32_0 = arith.constant 0 : i32
    %c0_i32_1 = arith.constant 0 : i32
    return %arg0, %arg1, %c0_i32, %c0_i32_0 : i32, i32, i32, i32
  }
  func.func @transform_1(%arg0: i32, %arg1: i32, %arg2: i32) -> (i32, i32, i32, i32) {
    %c0_i32 = arith.constant 0 : i32
    %c0_i32_0 = arith.constant 0 : i32
    %c0_i32_1 = arith.constant 0 : i32
    return %arg0, %arg1, %c0_i32, %c0_i32_0 : i32, i32, i32, i32
  }
  func.func @transform_2(%arg0: i32, %arg1: i32, %arg2: i32) -> (i32, i32, i32, i32, i32) {
    %c0_i32 = arith.constant 0 : i32
    %c0_i32_0 = arith.constant 0 : i32
    %c0_i32_1 = arith.constant 0 : i32
    return %arg0, %arg1, %arg2, %c0_i32, %c0_i32_0 : i32, i32, i32, i32, i32
  }
  func.func @transform_3(%arg0: i32, %arg1: i32, %arg2: i32) -> (i32, i32, i32, i32, i32, i32) {
    %c0_i32 = arith.constant 0 : i32
    %c0_i32_0 = arith.constant 0 : i32
    %c0_i32_1 = arith.constant 0 : i32
    %c0_i32_2 = arith.constant 0 : i32
    return %arg0, %arg1, %arg2, %c0_i32, %c0_i32_0, %c0_i32_1 : i32, i32, i32, i32, i32, i32
  }
}

</mosaic_0001>

<bundles_post_ra>
// kernel: second_order_scorer_forward.3
= control target key start
LH: loop header
LB: loop body
LE: loop exit
PB: predicated region body
PF: predicated region fallthrough
CT: control target
= control target key end

     0   :  { %8 = vsyncpa [#allocation3], 0  ;;  %s113_s15 = smov [#allocation2]   ;;  %s114_s17 = smov 128   ;;  %s160_s0 = inlined_call_operand.hbm [shape: f32[16,32], index: 0, kind: input, shape index: {}]   ;;  %s161_s1 = inlined_call_operand.vmem [shape: f32[32,128], index: 1, kind: input, shape index: {}]   ;;  %s162_s2 = inlined_call_operand.vmem [shape: f32[1,128], index: 2, kind: input, shape index: {}]   ;;  %s163_s3 = inlined_call_operand.vmem [shape: f32[16,128], index: 3, kind: output, shape index: {}]  }
   0x1   :  { %s13_s14 = sshll.u32 %s160_s0, 4  ;;  %s15_s16 = sshll.u32 %s113_s15, 4  ;;  %s14_s14 = int_to_ptr.hbm [resolvable:$true] %s13_s14  ;;  %s16_s16 = int_to_ptr.vmem [resolvable:$true] %s15_s16 }
   0x2   :  { %s115_s18 = smov 8  }
   0x3   :  { %21 = dma.hbm_to_vmem [thread:$0]  %s14_s14, 256, %s16_s16, [#allocation3], %s114_s17, %s114_s17, %s115_s18  }
   0x4   :  { %111 = dma.done.wait [#allocation3], 256  }
   0x5   :  { %112 = vsyncadd [#allocation3], 4294967040  ;;  %v35_v0 = vld [vmem:[%s161_s1 + $0x18] sm:$0xff]  ;;  %v34_v1 = vld [vmem:[%s161_s1 + $0x10] sm:$0xff]  ;;  %vm40_vm0 = vcmask 261120  }
   0x6   :  { %59 = vmatpush.msra.mxu0 %v35_v0  ;;  %79 = vmatpush.msra.mxu1 %v35_v0  ;;  %v33_v2 = vld [vmem:[%s161_s1 + $0x8] sm:$0xff]  ;;  %v32_v3 = vld [vmem:[%s161_s1] sm:$0xff] }
   0x7   :  { %v30_v4 = vld [vmem:[#allocation2] sm:$0xff]  ;;  %v31_v5 = vld [vmem:[#allocation2 + $0x8] sm:$0xff] }
   0x8   :  { %60 = vmatpush.msra.mxu0 %v34_v1  ;;  %80 = vmatpush.msra.mxu1 %v34_v1  ;;  %v86_v6 = vld [vmem:[%s162_s2] ss:$0 sm:$0xff] }
   0xa   :  { %61 = vmatpush.msra.mxu0 %v33_v2  ;;  %81 = vmatpush.msra.mxu1 %v33_v2 }
   0xc   :  { %62 = vmatpush.msra.mxu0 %v32_v3  ;;  %82 = vmatpush.msra.mxu1 %v32_v3 }
   0xd   :  { %77 = vmatmul.msk.f32.vlgmr.msra.gmra.mxu0 %vm40_vm0, %v30_v4  ;;  %78 = vmatmul.msk.f32.vlgmr.msra.gmra.mxu1 %vm40_vm0, %v31_v5 }
  0x8a   :  { %v64_v7 = vpop.f32.mrf.mxu0  ;;  %v67_v8 = vpop.f32.mrf.mxu1 }
  0x8b   :  { %v65_v9 = vadd.f32 %v86_v6, %v64_v7  ;;  %v68_v10 = vadd.f32 %v86_v6, %v67_v8 }
  0x8d   :  { %70 = vst [vmem:[%s163_s3] sm:$0xff] %v65_v9 }
  0x8e   :  { %71 = vst [vmem:[%s163_s3 + $0x8] sm:$0xff] %v68_v10 }
  0x8f   :  { %76 = vsyncpa [#allocation3], 1 }

// kernel: second_order_scorer_forward.4
= control target key start
LH: loop header
LB: loop body
LE: loop exit
PB: predicated region body
PF: predicated region fallthrough
CT: control target
= control target key end

     0   :  { %s1446_s9 = smov 0   ;;  %s1448_s10 = smov 0   ;;  %s1819_s0 = inlined_call_operand.vmem [shape: f32[2,16,32], index: 0, kind: input, shape index: {}]   ;;  %s1820_s1 = inlined_call_operand.vmem [shape: f32[2,32,4096], index: 1, kind: input, shape index: {}]   ;;  %s1821_s2 = inlined_call_operand.vmem [shape: f32[2,16,4096], index: 2, kind: output, shape index: {}]  }
   0x1   :  { %s1450_s11 = smov 0  }
   0x2 LB: > { %s31_s12 = sadd.s32 1, %s1425_s10  ;;  %p1307_p0 = scmp.ge.s32.totalorder %s1429_s11, 1  ;;  %s1429_s11 = sphi %s1450_s11, %s12_s11   ;;  %s1425_s10 = sphi %s1448_s10, %s1823_s10   ;;  %s1421_s9 = sphi %s1446_s9, %s1822_s9  }
   0x3   : > { %p33_p1 = scmp.ge.s32.totalorder %s31_s12, 2  ;;  %p159_p2 = scmp.lt.s32.totalorder %s1429_s11, 3 }
   0x5   : > { %s1825_s12 = smov (%p33_p1, %s31_s12), 0  ;;  %p160_p3 = pnand %p1307_p0, %p159_p2 }
   0x6   : > { %p204_p4 = scmp.lt.s32.totalorder (!%p160_p3), %s1421_s9, 1 }
   0x7   : > { %163 = sbr.rel (%p160_p3) target bundleno = 277 (0x115), region = 28 }
   0xc   : > { %s1827_s9 = smov (!%p204_p4, %s1421_s9), 1  ;;  %vm369_vm0 = vcmask 261120  }
   0xd   : > { %s1381_s13 = sshll.u32 %s1827_s9, 10  ;;  %s1380_s17 = sshll.u32 %s1827_s9, 4 }
   0xe   : > { %s1470_s16 = scalar_lea.vmem %s1820_s1, %s1381_s13  ;;  %s1484_s20 = scalar_lea.vmem %s1819_s0, %s1380_s17 }
   0xf   : > { %v339_v0 = vld [vmem:[%s1470_s16 + $0x310] sm:$0xff]  ;;  %v340_v1 = vld [vmem:[%s1470_s16 + $0x318] sm:$0xff]  ;;  %v337_v6 = vld [vmem:[%s1470_s16 + $0x300] sm:$0xff]  ;;  %s1382_s21 = sshll.u32 %s1827_s9, 9 }
  0x10   : > { %v307_v2 = vld [vmem:[%s1470_s16 + $0x210] sm:$0xff]  ;;  %434 = vmatpush.msra.mxu2 %v339_v0  ;;  %457 = vmatpush.msra.mxu3 %v340_v1  ;;  %v308_v3 = vld [vmem:[%s1470_s16 + $0x218] sm:$0xff]  ;;  %v338_v7 = vld [vmem:[%s1470_s16 + $0x308] sm:$0xff]  ;;  %s1744_s24 = scalar_lea.vmem %s1821_s2, %s1382_s21 }
  0x11   : > { %v275_v4 = vld [vmem:[%s1470_s16 + $0x110] sm:$0xff]  ;;  %v276_v5 = vld [vmem:[%s1470_s16 + $0x118] sm:$0xff]  ;;  %388 = vmatpush.msra.mxu0 %v337_v6  ;;  %411 = vmatpush.msra.mxu1 %v338_v7  ;;  %v305_v10 = vld [vmem:[%s1470_s16 + $0x200] sm:$0xff] }
  0x12   : > { %435 = vmatpush.msra.mxu2 %v307_v2  ;;  %458 = vmatpush.msra.mxu3 %v308_v3  ;;  %v243_v8 = vld [vmem:[%s1470_s16 + $0x10] sm:$0xff]  ;;  %v244_v9 = vld [vmem:[%s1470_s16 + $0x18] sm:$0xff]  ;;  %v306_v11 = vld [vmem:[%s1470_s16 + $0x208] sm:$0xff] }
  0x13   : > { %v1491_v12 = vld [vmem:[%s1484_s20] sm:$0xff]  ;;  %v343_v13 = vld [vmem:[%s1470_s16 + $0x330] sm:$0xff]  ;;  %v344_v14 = vld [vmem:[%s1470_s16 + $0x338] sm:$0xff]  ;;  %389 = vmatpush.msra.mxu0 %v305_v10  ;;  %412 = vmatpush.msra.mxu1 %v306_v11 }
  0x14   : > { %436 = vmatpush.msra.mxu2 %v275_v4  ;;  %459 = vmatpush.msra.mxu3 %v276_v5  ;;  %v273_v15 = vld [vmem:[%s1470_s16 + $0x100] sm:$0xff]  ;;  %v274_v16 = vld [vmem:[%s1470_s16 + $0x108] sm:$0xff]  ;;  %v311_v17 = vld [vmem:[%s1470_s16 + $0x230] sm:$0xff] }
  0x15   : > { %v312_v18 = vld [vmem:[%s1470_s16 + $0x238] sm:$0xff]  ;;  %v241_v19 = vld [vmem:[%s1470_s16] sm:$0xff]  ;;  %v242_v20 = vld [vmem:[%s1470_s16 + $0x8] sm:$0xff]  ;;  %390 = vmatpush.msra.mxu0 %v273_v15  ;;  %413 = vmatpush.msra.mxu1 %v274_v16 }
  0x16   : > { %437 = vmatpush.msra.mxu2 %v243_v8  ;;  %460 = vmatpush.msra.mxu3 %v244_v9  ;;  %v341_v21 = vld [vmem:[%s1470_s16 + $0x320] sm:$0xff]  ;;  %v342_v22 = vld [vmem:[%s1470_s16 + $0x328] sm:$0xff]  ;;  %v279_v23 = vld [vmem:[%s1470_s16 + $0x130] sm:$0xff] }
  0x17   : > { %1318 = vmatmul.msk.f32.vlgmr.msra.gmra.mxu2 %vm369_vm0, %v1491_v12  ;;  %1320 = vmatmul.msk.f32.vlgmr.msra.gmra.mxu3 %vm369_vm0, %v1491_v12  ;;  %v280_v24 = vld [vmem:[%s1470_s16 + $0x138] sm:$0xff]  ;;  %v1514_v25 = vld [vmem:[%s1484_s20 + $0x8] sm:$0xff]  ;;  %v309_v26 = vld [vmem:[%s1470_s16 + $0x220] sm:$0xff] }
  0x18   : > { %526 = vmatpush.msrb.mxu2 %v343_v13  ;;  %549 = vmatpush.msrb.mxu3 %v344_v14  ;;  %v310_v27 = vld [vmem:[%s1470_s16 + $0x228] sm:$0xff]  ;;  %v247_v28 = vld [vmem:[%s1470_s16 + $0x30] sm:$0xff]  ;;  %v248_v29 = vld [vmem:[%s1470_s16 + $0x38] sm:$0xff] }
  0x19   : > { %391 = vmatpush.msra.mxu0 %v241_v19  ;;  %414 = vmatpush.msra.mxu1 %v242_v20  ;;  %v277_v30 = vld [vmem:[%s1470_s16 + $0x120] sm:$0xff]  ;;  %v278_v31 = vld [vmem:[%s1470_s16 + $0x128] sm:$0xff]  ;;  %v347_v32 = vld [vmem:[%s1470_s16 + $0x350] sm:$0xff] }
  0x1a   : > { %527 = vmatpush.msrb.mxu2 %v311_v17  ;;  %550 = vmatpush.msrb.mxu3 %v312_v18  ;;  %v348_v33 = vld [vmem:[%s1470_s16 + $0x358] sm:$0xff]  ;;  %v245_v34 = vld [vmem:[%s1470_s16 + $0x20] sm:$0xff]  ;;  %v246_v35 = vld [vmem:[%s1470_s16 + $0x28] sm:$0xff] }
  0x1b   : > { %1314 = vmatmul.msk.f32.vlgmr.msra.gmra.mxu0 %vm369_vm0, %v1491_v12  ;;  %1316 = vmatmul.msk.f32.vlgmr.msra.gmra.mxu1 %vm369_vm0, %v1491_v12  ;;  %v315_v36 = vld [vmem:[%s1470_s16 + $0x250] sm:$0xff]  ;;  %v316_v37 = vld [vmem:[%s1470_s16 + $0x258] sm:$0xff]  ;;  %v345_v38 = vld [vmem:[%s1470_s16 + $0x340] sm:$0xff] }
  0x1c   : > { %480 = vmatpush.msrb.mxu0 %v341_v21  ;;  %503 = vmatpush.msrb.mxu1 %v342_v22  ;;  %v346_v39 = vld [vmem:[%s1470_s16 + $0x348] sm:$0xff]  ;;  %v283_v40 = vld [vmem:[%s1470_s16 + $0x150] sm:$0xff]  ;;  %v284_v41 = vld [vmem:[%s1470_s16 + $0x158] sm:$0xff] }
  0x1d   : > { %528 = vmatpush.msrb.mxu2 %v279_v23  ;;  %551 = vmatpush.msrb.mxu3 %v280_v24  ;;  %v313_v42 = vld [vmem:[%s1470_s16 + $0x240] sm:$0xff]  ;;  %v314_v43 = vld [vmem:[%s1470_s16 + $0x248] sm:$0xff]  ;;  %v251_v44 = vld [vmem:[%s1470_s16 + $0x50] sm:$0xff] }
  0x1e   : > { %481 = vmatpush.msrb.mxu0 %v309_v26  ;;  %504 = vmatpush.msrb.mxu1 %v310_v27  ;;  %v252_v45 = vld [vmem:[%s1470_s16 + $0x58] sm:$0xff]  ;;  %v281_v46 = vld [vmem:[%s1470_s16 + $0x140] sm:$0xff]  ;;  %v282_v47 = vld [vmem:[%s1470_s16 + $0x148] sm:$0xff] }
  0x1f   : > { %1319 = vmatmul.msk.f32.gmra.mxu2 %vm369_vm0, %v1514_v25  ;;  %1321 = vmatmul.msk.f32.gmra.mxu3 %vm369_vm0, %v1514_v25  ;;  %v351_v48 = vld [vmem:[%s1470_s16 + $0x370] sm:$0xff]  ;;  %v352_v49 = vld [vmem:[%s1470_s16 + $0x378] sm:$0xff]  ;;  %v249_v50 = vld [vmem:[%s1470_s16 + $0x40] sm:$0xff] }
  0x20   : > { %529 = vmatpush.msrb.mxu2 %v247_v28  ;;  %552 = vmatpush.msrb.mxu3 %v248_v29  ;;  %v250_v51 = vld [vmem:[%s1470_s16 + $0x48] sm:$0xff]  ;;  %v319_v52 = vld [vmem:[%s1470_s16 + $0x270] sm:$0xff]  ;;  %v320_v53 = vld [vmem:[%s1470_s16 + $0x278] sm:$0xff] }
  0x21   : > { %482 = vmatpush.msrb.mxu0 %v277_v30  ;;  %505 = vmatpush.msrb.mxu1 %v278_v31  ;;  %v349_v54 = vld [vmem:[%s1470_s16 + $0x360] sm:$0xff]  ;;  %v350_v55 = vld [vmem:[%s1470_s16 + $0x368] sm:$0xff]  ;;  %v287_v56 = vld [vmem:[%s1470_s16 + $0x170] sm:$0xff] }
  0x22   : > { %618 = vmatpush.msra.mxu2 %v347_v32  ;;  %641 = vmatpush.msra.mxu3 %v348_v33  ;;  %v288_v57 = vld [vmem:[%s1470_s16 + $0x178] sm:$0xff]  ;;  %v317_v58 = vld [vmem:[%s1470_s16 + $0x260] sm:$0xff]  ;;  %v318_v59 = vld [vmem:[%s1470_s16 + $0x268] sm:$0xff] }
  0x23   : > { %1315 = vmatmul.msk.f32.gmra.mxu0 %vm369_vm0, %v1514_v25  ;;  %1317 = vmatmul.msk.f32.gmra.mxu1 %vm369_vm0, %v1514_v25  ;;  %v255_v60 = vld [vmem:[%s1470_s16 + $0x70] sm:$0xff]  ;;  %v256_v61 = vld [vmem:[%s1470_s16 + $0x78] sm:$0xff]  ;;  %v285_v62 = vld [vmem:[%s1470_s16 + $0x160] sm:$0xff] }
  0x24   : > { %483 = vmatpush.msrb.mxu0 %v245_v34  ;;  %506 = vmatpush.msrb.mxu1 %v246_v35  ;;  %v286_v63 = vld [vmem:[%s1470_s16 + $0x168] sm:$0xff]  ;;  %v355_v0 = vld [vmem:[%s1470_s16 + $0x390] sm:$0xff]  ;;  %v356_v1 = vld [vmem:[%s1470_s16 + $0x398] sm:$0xff] }
  0x25   : > { %619 = vmatpush.msra.mxu2 %v315_v36  ;;  %642 = vmatpush.msra.mxu3 %v316_v37  ;;  %v253_v2 = vld [vmem:[%s1470_s16 + $0x60] sm:$0xff]  ;;  %v254_v3 = vld [vmem:[%s1470_s16 + $0x68] sm:$0xff]  ;;  %v323_v4 = vld [vmem:[%s1470_s16 + $0x290] sm:$0xff] }
  0x26   : > { %572 = vmatpush.msra.mxu0 %v345_v38  ;;  %595 = vmatpush.msra.mxu1 %v346_v39  ;;  %v324_v5 = vld [vmem:[%s1470_s16 + $0x298] sm:$0xff]  ;;  %v353_v6 = vld [vmem:[%s1470_s16 + $0x380] sm:$0xff]  ;;  %v354_v7 = vld [vmem:[%s1470_s16 + $0x388] sm:$0xff] }
  0x27   : > { %1326 = vmatmul.msk.f32.vlgmr.msrb.gmra.mxu2 %vm369_vm0, %v1491_v12  ;;  %1328 = vmatmul.msk.f32.vlgmr.msrb.gmra.mxu3 %vm369_vm0, %v1491_v12  ;;  %v291_v8 = vld [vmem:[%s1470_s16 + $0x190] sm:$0xff]  ;;  %v292_v9 = vld [vmem:[%s1470_s16 + $0x198] sm:$0xff]  ;;  %v321_v10 = vld [vmem:[%s1470_s16 + $0x280] sm:$0xff] }
  0x28   : > { %620 = vmatpush.msra.mxu2 %v283_v40  ;;  %643 = vmatpush.msra.mxu3 %v284_v41  ;;  %v322_v11 = vld [vmem:[%s1470_s16 + $0x288] sm:$0xff]  ;;  %v259_v13 = vld [vmem:[%s1470_s16 + $0x90] sm:$0xff]  ;;  %v260_v14 = vld [vmem:[%s1470_s16 + $0x98] sm:$0xff] }
  0x29   : > { %573 = vmatpush.msra.mxu0 %v313_v42  ;;  %596 = vmatpush.msra.mxu1 %v314_v43  ;;  %v289_v15 = vld [vmem:[%s1470_s16 + $0x180] sm:$0xff]  ;;  %v290_v16 = vld [vmem:[%s1470_s16 + $0x188] sm:$0xff]  ;;  %v359_v19 = vld [vmem:[%s1470_s16 + $0x3b0] sm:$0xff] }
  0x2a   : > { %621 = vmatpush.msra.mxu2 %v251_v44  ;;  %644 = vmatpush.msra.mxu3 %v252_v45  ;;  %v257_v17 = vld [vmem:[%s1470_s16 + $0x80] sm:$0xff]  ;;  %v258_v18 = vld [vmem:[%s1470_s16 + $0x88] sm:$0xff]  ;;  %v360_v20 = vld [vmem:[%s1470_s16 + $0x3b8] sm:$0xff] }
  0x2b   : > { %1322 = vmatmul.msk.f32.vlgmr.msrb.gmra.mxu0 %vm369_vm0, %v1491_v12  ;;  %1324 = vmatmul.msk.f32.vlgmr.msrb.gmra.mxu1 %vm369_vm0, %v1491_v12  ;;  %v327_v21 = vld [vmem:[%s1470_s16 + $0x2b0] sm:$0xff]  ;;  %v328_v22 = vld [vmem:[%s1470_s16 + $0x2b8] sm:$0xff]  ;;  %v357_v23 = vld [vmem:[%s1470_s16 + $0x3a0] sm:$0xff] }
  0x2c   : > { %574 = vmatpush.msra.mxu0 %v281_v46  ;;  %597 = vmatpush.msra.mxu1 %v282_v47  ;;  %v358_v24 = vld [vmem:[%s1470_s16 + $0x3a8] sm:$0xff]  ;;  %v295_v26 = vld [vmem:[%s1470_s16 + $0x1b0] sm:$0xff]  ;;  %v296_v27 = vld [vmem:[%s1470_s16 + $0x1b8] sm:$0xff] }
  0x2d   : > { %710 = vmatpush.msrb.mxu2 %v351_v48  ;;  %733 = vmatpush.msrb.mxu3 %v352_v49  ;;  %v325_v28 = vld [vmem:[%s1470_s16 + $0x2a0] sm:$0xff]  ;;  %v326_v29 = vld [vmem:[%s1470_s16 + $0x2a8] sm:$0xff]  ;;  %v263_v30 = vld [vmem:[%s1470_s16 + $0xb0] sm:$0xff] }
  0x2e   : > { %575 = vmatpush.msra.mxu0 %v249_v50  ;;  %598 = vmatpush.msra.mxu1 %v250_v51  ;;  %v264_v31 = vld [vmem:[%s1470_s16 + $0xb8] sm:$0xff]  ;;  %v293_v32 = vld [vmem:[%s1470_s16 + $0x1a0] sm:$0xff]  ;;  %v294_v33 = vld [vmem:[%s1470_s16 + $0x1a8] sm:$0xff] }
  0x2f   : > { %1327 = vmatmul.msk.f32.gmra.mxu2 %vm369_vm0, %v1514_v25  ;;  %1329 = vmatmul.msk.f32.gmra.mxu3 %vm369_vm0, %v1514_v25  ;;  %v261_v34 = vld [vmem:[%s1470_s16 + $0xa0] sm:$0xff]  ;;  %v262_v35 = vld [vmem:[%s1470_s16 + $0xa8] sm:$0xff]  ;;  %v363_v36 = vld [vmem:[%s1470_s16 + $0x3d0] sm:$0xff] }
  0x30   : > { %711 = vmatpush.msrb.mxu2 %v319_v52  ;;  %734 = vmatpush.msrb.mxu3 %v320_v53  ;;  %v364_v37 = vld [vmem:[%s1470_s16 + $0x3d8] sm:$0xff]  ;;  %v331_v38 = vld [vmem:[%s1470_s16 + $0x2d0] sm:$0xff]  ;;  %v361_v40 = vld [vmem:[%s1470_s16 + $0x3c0] sm:$0xff] }
  0x31   : > { %664 = vmatpush.msrb.mxu0 %v349_v54  ;;  %687 = vmatpush.msrb.mxu1 %v350_v55  ;;  %v332_v39 = vld [vmem:[%s1470_s16 + $0x2d8] sm:$0xff]  ;;  %v362_v41 = vld [vmem:[%s1470_s16 + $0x3c8] sm:$0xff]  ;;  %v299_v42 = vld [vmem:[%s1470_s16 + $0x1d0] sm:$0xff] }
  0x32   : > { %712 = vmatpush.msrb.mxu2 %v287_v56  ;;  %735 = vmatpush.msrb.mxu3 %v288_v57  ;;  %v300_v43 = vld [vmem:[%s1470_s16 + $0x1d8] sm:$0xff]  ;;  %v329_v44 = vld [vmem:[%s1470_s16 + $0x2c0] sm:$0xff]  ;;  %v330_v45 = vld [vmem:[%s1470_s16 + $0x2c8] sm:$0xff] }
  0x33   : > { %1323 = vmatmul.msk.f32.gmra.mxu0 %vm369_vm0, %v1514_v25  ;;  %1325 = vmatmul.msk.f32.gmra.mxu1 %vm369_vm0, %v1514_v25  ;;  %v267_v46 = vld [vmem:[%s1470_s16 + $0xd0] sm:$0xff]  ;;  %v268_v47 = vld [vmem:[%s1470_s16 + $0xd8] sm:$0xff]  ;;  %v297_v48 = vld [vmem:[%s1470_s16 + $0x1c0] sm:$0xff] }
  0x34   : > { %665 = vmatpush.msrb.mxu0 %v317_v58  ;;  %688 = vmatpush.msrb.mxu1 %v318_v59  ;;  %v298_v49 = vld [vmem:[%s1470_s16 + $0x1c8] sm:$0xff]  ;;  %v265_v50 = vld [vmem:[%s1470_s16 + $0xc0] sm:$0xff]  ;;  %v367_v52 = vld [vmem:[%s1470_s16 + $0x3f0] sm:$0xff] }
  0x35   : > { %713 = vmatpush.msrb.mxu2 %v255_v60  ;;  %736 = vmatpush.msrb.mxu3 %v256_v61  ;;  %v266_v51 = vld [vmem:[%s1470_s16 + $0xc8] sm:$0xff]  ;;  %v368_v53 = vld [vmem:[%s1470_s16 + $0x3f8] sm:$0xff]  ;;  %v335_v54 = vld [vmem:[%s1470_s16 + $0x2f0] sm:$0xff] }
  0x36   : > { %666 = vmatpush.msrb.mxu0 %v285_v62  ;;  %689 = vmatpush.msrb.mxu1 %v286_v63  ;;  %v336_v55 = vld [vmem:[%s1470_s16 + $0x2f8] sm:$0xff]  ;;  %v365_v56 = vld [vmem:[%s1470_s16 + $0x3e0] sm:$0xff]  ;;  %v366_v57 = vld [vmem:[%s1470_s16 + $0x3e8] sm:$0xff] }
  0x37   : > { %1334 = vmatmul.msk.f32.vlgmr.msra.gmra.mxu2 %vm369_vm0, %v1491_v12  ;;  %1336 = vmatmul.msk.f32.vlgmr.msra.gmra.mxu3 %vm369_vm0, %v1491_v12  ;;  %v303_v58 = vld [vmem:[%s1470_s16 + $0x1f0] sm:$0xff]  ;;  %v304_v59 = vld [vmem:[%s1470_s16 + $0x1f8] sm:$0xff]  ;;  %v333_v60 = vld [vmem:[%s1470_s16 + $0x2e0] sm:$0xff] }
  0x38   : > { %802 = vmatpush.msra.mxu2 %v355_v0  ;;  %825 = vmatpush.msra.mxu3 %v356_v1  ;;  %v334_v61 = vld [vmem:[%s1470_s16 + $0x2e8] sm:$0xff]  ;;  %v271_v62 = vld [vmem:[%s1470_s16 + $0xf0] sm:$0xff]  ;;  %v272_v63 = vld [vmem:[%s1470_s16 + $0xf8] sm:$0xff] }
  0x39   : > { %667 = vmatpush.msrb.mxu0 %v253_v2  ;;  %690 = vmatpush.msrb.mxu1 %v254_v3  ;;  %v301_v0 = vld [vmem:[%s1470_s16 + $0x1e0] sm:$0xff]  ;;  %v302_v1 = vld [vmem:[%s1470_s16 + $0x1e8] sm:$0xff] }
  0x3a   : > { %803 = vmatpush.msra.mxu2 %v323_v4  ;;  %826 = vmatpush.msra.mxu3 %v324_v5  ;;  %v269_v2 = vld [vmem:[%s1470_s16 + $0xe0] sm:$0xff]  ;;  %v270_v3 = vld [vmem:[%s1470_s16 + $0xe8] sm:$0xff] }
  0x3b   : > { %1330 = vmatmul.msk.f32.vlgmr.msra.gmra.mxu0 %vm369_vm0, %v1491_v12  ;;  %1332 = vmatmul.msk.f32.vlgmr.msra.gmra.mxu1 %vm369_vm0, %v1491_v12 }
  0x3c   : > { %756 = vmatpush.msra.mxu0 %v353_v6  ;;  %779 = vmatpush.msra.mxu1 %v354_v7 }
  0x3d   : > { %804 = vmatpush.msra.mxu2 %v291_v8  ;;  %827 = vmatpush.msra.mxu3 %v292_v9 }
  0x3e   : > { %757 = vmatpush.msra.mxu0 %v321_v10  ;;  %780 = vmatpush.msra.mxu1 %v322_v11 }
  0x3f   : > { %1335 = vmatmul.msk.f32.gmra.mxu2 %vm369_vm0, %v1514_v25  ;;  %1337 = vmatmul.msk.f32.gmra.mxu3 %vm369_vm0, %v1514_v25 }
  0x40   : > { %805 = vmatpush.msra.mxu2 %v259_v13  ;;  %828 = vmatpush.msra.mxu3 %v260_v14 }
  0x41   : > { %758 = vmatpush.msra.mxu0 %v289_v15  ;;  %781 = vmatpush.msra.mxu1 %v290_v16 }
  0x43   : > { %1331 = vmatmul.msk.f32.gmra.mxu0 %vm369_vm0, %v1514_v25  ;;  %1333 = vmatmul.msk.f32.gmra.mxu1 %vm369_vm0, %v1514_v25 }
  0x44   : > { %759 = vmatpush.msra.mxu0 %v257_v17  ;;  %782 = vmatpush.msra.mxu1 %v258_v18 }
  0x47   : > { %1342 = vmatmul.msk.f32.vlgmr.msrb.gmra.mxu2 %vm369_vm0, %v1491_v12  ;;  %1344 = vmatmul.msk.f32.vlgmr.msrb.gmra.mxu3 %vm369_vm0, %v1491_v12 }
  0x48   : > { %894 = vmatpush.msrb.mxu2 %v359_v19  ;;  %917 = vmatpush.msrb.mxu3 %v360_v20 }
  0x4a   : > { %895 = vmatpush.msrb.mxu2 %v327_v21  ;;  %918 = vmatpush.msrb.mxu3 %v328_v22 }
  0x4b   : > { %1338 = vmatmul.msk.f32.vlgmr.msrb.gmra.mxu0 %vm369_vm0, %v1491_v12  ;;  %1340 = vmatmul.msk.f32.vlgmr.msrb.gmra.mxu1 %vm369_vm0, %v1491_v12 }
  0x4c   : > { %848 = vmatpush.msrb.mxu0 %v357_v23  ;;  %871 = vmatpush.msrb.mxu1 %v358_v24 }
  0x4d   : > { %896 = vmatpush.msrb.mxu2 %v295_v26  ;;  %919 = vmatpush.msrb.mxu3 %v296_v27 }
  0x4e   : > { %849 = vmatpush.msrb.mxu0 %v325_v28  ;;  %872 = vmatpush.msrb.mxu1 %v326_v29 }
  0x4f   : > { %1343 = vmatmul.msk.f32.gmra.mxu2 %vm369_vm0, %v1514_v25  ;;  %1345 = vmatmul.msk.f32.gmra.mxu3 %vm369_vm0, %v1514_v25 }
  0x50   : > { %897 = vmatpush.msrb.mxu2 %v263_v30  ;;  %920 = vmatpush.msrb.mxu3 %v264_v31 }
  0x51   : > { %850 = vmatpush.msrb.mxu0 %v293_v32  ;;  %873 = vmatpush.msrb.mxu1 %v294_v33 }
  0x53   : > { %1339 = vmatmul.msk.f32.gmra.mxu0 %vm369_vm0, %v1514_v25  ;;  %1341 = vmatmul.msk.f32.gmra.mxu1 %vm369_vm0, %v1514_v25 }
  0x54   : > { %851 = vmatpush.msrb.mxu0 %v261_v34  ;;  %874 = vmatpush.msrb.mxu1 %v262_v35 }
  0x57   : > { %1350 = vmatmul.msk.f32.vlgmr.msra.gmra.mxu2 %vm369_vm0, %v1491_v12  ;;  %1352 = vmatmul.msk.f32.vlgmr.msra.gmra.mxu3 %vm369_vm0, %v1491_v12 }
  0x58   : > { %986 = vmatpush.msra.mxu2 %v363_v36  ;;  %1009 = vmatpush.msra.mxu3 %v364_v37 }
  0x5a   : > { %987 = vmatpush.msra.mxu2 %v331_v38  ;;  %1010 = vmatpush.msra.mxu3 %v332_v39 }
  0x5b   : > { %1346 = vmatmul.msk.f32.vlgmr.msra.gmra.mxu0 %vm369_vm0, %v1491_v12  ;;  %1348 = vmatmul.msk.f32.vlgmr.msra.gmra.mxu1 %vm369_vm0, %v1491_v12 }
  0x5c   : > { %940 = vmatpush.msra.mxu0 %v361_v40  ;;  %963 = vmatpush.msra.mxu1 %v362_v41 }
  0x5d   : > { %988 = vmatpush.msra.mxu2 %v299_v42  ;;  %1011 = vmatpush.msra.mxu3 %v300_v43 }
  0x5e   : > { %941 = vmatpush.msra.mxu0 %v329_v44  ;;  %964 = vmatpush.msra.mxu1 %v330_v45 }
  0x5f   : > { %1351 = vmatmul.msk.f32.gmra.mxu2 %vm369_vm0, %v1514_v25  ;;  %1353 = vmatmul.msk.f32.gmra.mxu3 %vm369_vm0, %v1514_v25 }
  0x60   : > { %989 = vmatpush.msra.mxu2 %v267_v46  ;;  %1012 = vmatpush.msra.mxu3 %v268_v47 }
  0x61   : > { %942 = vmatpush.msra.mxu0 %v297_v48  ;;  %965 = vmatpush.msra.mxu1 %v298_v49 }
  0x63   : > { %1347 = vmatmul.msk.f32.gmra.mxu0 %vm369_vm0, %v1514_v25  ;;  %1349 = vmatmul.msk.f32.gmra.mxu1 %vm369_vm0, %v1514_v25 }
  0x64   : > { %943 = vmatpush.msra.mxu0 %v265_v50  ;;  %966 = vmatpush.msra.mxu1 %v266_v51 }
  0x67   : > { %1358 = vmatmul.msk.f32.vlgmr.msrb.gmra.mxu2 %vm369_vm0, %v1491_v12  ;;  %1360 = vmatmul.msk.f32.vlgmr.msrb.gmra.mxu3 %vm369_vm0, %v1491_v12 }
  0x68   : > { %1078 = vmatpush.msrb.mxu2 %v367_v52  ;;  %1101 = vmatpush.msrb.mxu3 %v368_v53 }
  0x6a   : > { %1079 = vmatpush.msrb.mxu2 %v335_v54  ;;  %1102 = vmatpush.msrb.mxu3 %v336_v55 }
  0x6b   : > { %1354 = vmatmul.msk.f32.vlgmr.msrb.gmra.mxu0 %vm369_vm0, %v1491_v12  ;;  %1356 = vmatmul.msk.f32.vlgmr.msrb.gmra.mxu1 %vm369_vm0, %v1491_v12 }
  0x6c   : > { %1032 = vmatpush.msrb.mxu0 %v365_v56  ;;  %1055 = vmatpush.msrb.mxu1 %v366_v57 }
  0x6d   : > { %1080 = vmatpush.msrb.mxu2 %v303_v58  ;;  %1103 = vmatpush.msrb.mxu3 %v304_v59 }
  0x6e   : > { %1033 = vmatpush.msrb.mxu0 %v333_v60  ;;  %1056 = vmatpush.msrb.mxu1 %v334_v61 }
  0x6f   : > { %1359 = vmatmul.msk.f32.gmra.mxu2 %vm369_vm0, %v1514_v25  ;;  %1361 = vmatmul.msk.f32.gmra.mxu3 %vm369_vm0, %v1514_v25 }
  0x70   : > { %1081 = vmatpush.msrb.mxu2 %v271_v62  ;;  %1104 = vmatpush.msrb.mxu3 %v272_v63 }
  0x71   : > { %1034 = vmatpush.msrb.mxu0 %v301_v0  ;;  %1057 = vmatpush.msrb.mxu1 %v302_v1 }
  0x73   : > { %1355 = vmatmul.msk.f32.gmra.mxu0 %vm369_vm0, %v1514_v25  ;;  %1357 = vmatmul.msk.f32.gmra.mxu1 %vm369_vm0, %v1514_v25 }
  0x74   : > { %1035 = vmatpush.msrb.mxu0 %v269_v2  ;;  %1058 = vmatpush.msrb.mxu1 %v270_v3 }
  0x77   : > { %1366 = vmatmul.msk.f32.vlgmr.msra.gmra.mxu2 %vm369_vm0, %v1491_v12  ;;  %1368 = vmatmul.msk.f32.vlgmr.msra.gmra.mxu3 %vm369_vm0, %v1491_v12 }
  0x7b   : > { %1362 = vmatmul.msk.f32.vlgmr.msra.gmra.mxu0 %vm369_vm0, %v1491_v12  ;;  %1364 = vmatmul.msk.f32.vlgmr.msra.gmra.mxu1 %vm369_vm0, %v1491_v12 }
  0x7f   : > { %1367 = vmatmul.msk.f32.gmra.mxu2 %vm369_vm0, %v1514_v25  ;;  %1369 = vmatmul.msk.f32.gmra.mxu3 %vm369_vm0, %v1514_v25 }
  0x83   : > { %1363 = vmatmul.msk.f32.gmra.mxu0 %vm369_vm0, %v1514_v25  ;;  %1365 = vmatmul.msk.f32.gmra.mxu1 %vm369_vm0, %v1514_v25 }
  0x87   : > { %1374 = vmatmul.msk.f32.vlgmr.msrb.gmra.mxu2 %vm369_vm0, %v1491_v12  ;;  %1376 = vmatmul.msk.f32.vlgmr.msrb.gmra.mxu3 %vm369_vm0, %v1491_v12 }
  0x8b   : > { %1370 = vmatmul.msk.f32.vlgmr.msrb.gmra.mxu0 %vm369_vm0, %v1491_v12  ;;  %1372 = vmatmul.msk.f32.vlgmr.msrb.gmra.mxu1 %vm369_vm0, %v1491_v12 }
  0x8f   : > { %1375 = vmatmul.msk.f32.gmra.mxu2 %vm369_vm0, %v1514_v25  ;;  %1377 = vmatmul.msk.f32.gmra.mxu3 %vm369_vm0, %v1514_v25 }
  0x93   : > { %1371 = vmatmul.msk.f32.gmra.mxu0 %vm369_vm0, %v1514_v25  ;;  %1373 = vmatmul.msk.f32.gmra.mxu1 %vm369_vm0, %v1514_v25 }
  0x98   : > { %v393_v12 = vpop.f32.mrf.mxu0  ;;  %v416_v4 = vpop.f32.mrf.mxu1 }
  0x99   : > { %1112 = vst [vmem:[%s1744_s24] sm:$0xff] %v393_v12 }
  0x9a   : > { %v439_v5 = vpop.f32.mrf.mxu2  ;;  %v462_v25 = vpop.f32.mrf.mxu3  ;;  %1113 = vst [vmem:[%s1744_s24 + $0x8] sm:$0xff] %v416_v4 }
  0x9b   : > { %1114 = vst [vmem:[%s1744_s24 + $0x10] sm:$0xff] %v439_v5 }
  0x9c   : > { %1115 = vst [vmem:[%s1744_s24 + $0x18] sm:$0xff] %v462_v25 }
  0xa0   : > { %v396_v6 = vpop.f32.mrf.mxu0  ;;  %v419_v7 = vpop.f32.mrf.mxu1 }
  0xa1   : > { %1144 = vst [vmem:[%s1744_s24 + $0x100] sm:$0xff] %v396_v6 }
  0xa2   : > { %v442_v8 = vpop.f32.mrf.mxu2  ;;  %v465_v9 = vpop.f32.mrf.mxu3  ;;  %1145 = vst [vmem:[%s1744_s24 + $0x108] sm:$0xff] %v419_v7 }
  0xa3   : > { %1146 = vst [vmem:[%s1744_s24 + $0x110] sm:$0xff] %v442_v8 }
  0xa4   : > { %1147 = vst [vmem:[%s1744_s24 + $0x118] sm:$0xff] %v465_v9 }
  0xa8   : > { %v485_v10 = vpop.f32.mrf.mxu0  ;;  %v508_v11 = vpop.f32.mrf.mxu1 }
  0xa9   : > { %1116 = vst [vmem:[%s1744_s24 + $0x20] sm:$0xff] %v485_v10 }
  0xaa   : > { %v531_v13 = vpop.f32.mrf.mxu2  ;;  %v554_v14 = vpop.f32.mrf.mxu3  ;;  %1117 = vst [vmem:[%s1744_s24 + $0x28] sm:$0xff] %v508_v11 }
  0xab   : > { %1118 = vst [vmem:[%s1744_s24 + $0x30] sm:$0xff] %v531_v13 }
  0xac   : > { %1119 = vst [vmem:[%s1744_s24 + $0x38] sm:$0xff] %v554_v14 }
  0xb0   : > { %v488_v15 = vpop.f32.mrf.mxu0  ;;  %v511_v16 = vpop.f32.mrf.mxu1 }
  0xb1   : > { %1148 = vst [vmem:[%s1744_s24 + $0x120] sm:$0xff] %v488_v15 }
  0xb2   : > { %v534_v17 = vpop.f32.mrf.mxu2  ;;  %v557_v18 = vpop.f32.mrf.mxu3  ;;  %1149 = vst [vmem:[%s1744_s24 + $0x128] sm:$0xff] %v511_v16 }
  0xb3   : > { %1150 = vst [vmem:[%s1744_s24 + $0x130] sm:$0xff] %v534_v17 }
  0xb4   : > { %1151 = vst [vmem:[%s1744_s24 + $0x138] sm:$0xff] %v557_v18 }
  0xb8   : > { %v577_v19 = vpop.f32.mrf.mxu0  ;;  %v600_v20 = vpop.f32.mrf.mxu1 }
  0xb9   : > { %1120 = vst [vmem:[%s1744_s24 + $0x40] sm:$0xff] %v577_v19 }
  0xba   : > { %v623_v21 = vpop.f32.mrf.mxu2  ;;  %v646_v22 = vpop.f32.mrf.mxu3  ;;  %1121 = vst [vmem:[%s1744_s24 + $0x48] sm:$0xff] %v600_v20 }
  0xbb   : > { %1122 = vst [vmem:[%s1744_s24 + $0x50] sm:$0xff] %v623_v21 }
  0xbc   : > { %1123 = vst [vmem:[%s1744_s24 + $0x58] sm:$0xff] %v646_v22 }
  0xc0   : > { %v580_v23 = vpop.f32.mrf.mxu0  ;;  %v603_v24 = vpop.f32.mrf.mxu1 }
  0xc1   : > { %1152 = vst [vmem:[%s1744_s24 + $0x140] sm:$0xff] %v580_v23 }
  0xc2   : > { %v626_v26 = vpop.f32.mrf.mxu2  ;;  %v649_v27 = vpop.f32.mrf.mxu3  ;;  %1153 = vst [vmem:[%s1744_s24 + $0x148] sm:$0xff] %v603_v24 }
  0xc3   : > { %1154 = vst [vmem:[%s1744_s24 + $0x150] sm:$0xff] %v626_v26 }
  0xc4   : > { %1155 = vst [vmem:[%s1744_s24 + $0x158] sm:$0xff] %v649_v27 }
  0xc8   : > { %v669_v28 = vpop.f32.mrf.mxu0  ;;  %v692_v29 = vpop.f32.mrf.mxu1 }
  0xc9   : > { %1124 = vst [vmem:[%s1744_s24 + $0x60] sm:$0xff] %v669_v28 }
  0xca   : > { %v715_v30 = vpop.f32.mrf.mxu2  ;;  %v738_v31 = vpop.f32.mrf.mxu3  ;;  %1125 = vst [vmem:[%s1744_s24 + $0x68] sm:$0xff] %v692_v29 }
  0xcb   : > { %1126 = vst [vmem:[%s1744_s24 + $0x70] sm:$0xff] %v715_v30 }
  0xcc   : > { %1127 = vst [vmem:[%s1744_s24 + $0x78] sm:$0xff] %v738_v31 }
  0xd0   : > { %v672_v32 = vpop.f32.mrf.mxu0  ;;  %v695_v33 = vpop.f32.mrf.mxu1 }
  0xd1   : > { %1156 = vst [vmem:[%s1744_s24 + $0x160] sm:$0xff] %v672_v32 }
  0xd2   : > { %v718_v34 = vpop.f32.mrf.mxu2  ;;  %v741_v35 = vpop.f32.mrf.mxu3  ;;  %1157 = vst [vmem:[%s1744_s24 + $0x168] sm:$0xff] %v695_v33 }
  0xd3   : > { %1158 = vst [vmem:[%s1744_s24 + $0x170] sm:$0xff] %v718_v34 }
  0xd4   : > { %1159 = vst [vmem:[%s1744_s24 + $0x178] sm:$0xff] %v741_v35 }
  0xd8   : > { %v761_v36 = vpop.f32.mrf.mxu0  ;;  %v784_v37 = vpop.f32.mrf.mxu1 }
  0xd9   : > { %1128 = vst [vmem:[%s1744_s24 + $0x80] sm:$0xff] %v761_v36 }
  0xda   : > { %v807_v38 = vpop.f32.mrf.mxu2  ;;  %v830_v39 = vpop.f32.mrf.mxu3  ;;  %1129 = vst [vmem:[%s1744_s24 + $0x88] sm:$0xff] %v784_v37 }
  0xdb   : > { %1130 = vst [vmem:[%s1744_s24 + $0x90] sm:$0xff] %v807_v38 }
  0xdc   : > { %1131 = vst [vmem:[%s1744_s24 + $0x98] sm:$0xff] %v830_v39 }
  0xe0   : > { %v764_v40 = vpop.f32.mrf.mxu0  ;;  %v787_v41 = vpop.f32.mrf.mxu1 }
  0xe1   : > { %1160 = vst [vmem:[%s1744_s24 + $0x180] sm:$0xff] %v764_v40 }
  0xe2   : > { %v810_v42 = vpop.f32.mrf.mxu2  ;;  %v833_v43 = vpop.f32.mrf.mxu3  ;;  %1161 = vst [vmem:[%s1744_s24 + $0x188] sm:$0xff] %v787_v41 }
  0xe3   : > { %1162 = vst [vmem:[%s1744_s24 + $0x190] sm:$0xff] %v810_v42 }
  0xe4   : > { %1163 = vst [vmem:[%s1744_s24 + $0x198] sm:$0xff] %v833_v43 }
  0xe8   : > { %v853_v44 = vpop.f32.mrf.mxu0  ;;  %v876_v45 = vpop.f32.mrf.mxu1 }
  0xe9   : > { %1132 = vst [vmem:[%s1744_s24 + $0xa0] sm:$0xff] %v853_v44 }
  0xea   : > { %v899_v46 = vpop.f32.mrf.mxu2  ;;  %v922_v47 = vpop.f32.mrf.mxu3  ;;  %1133 = vst [vmem:[%s1744_s24 + $0xa8] sm:$0xff] %v876_v45 }
  0xeb   : > { %1134 = vst [vmem:[%s1744_s24 + $0xb0] sm:$0xff] %v899_v46 }
  0xec   : > { %1135 = vst [vmem:[%s1744_s24 + $0xb8] sm:$0xff] %v922_v47 }
  0xf0   : > { %v856_v48 = vpop.f32.mrf.mxu0  ;;  %v879_v49 = vpop.f32.mrf.mxu1 }
  0xf1   : > { %1164 = vst [vmem:[%s1744_s24 + $0x1a0] sm:$0xff] %v856_v48 }
  0xf2   : > { %v902_v50 = vpop.f32.mrf.mxu2  ;;  %v925_v51 = vpop.f32.mrf.mxu3  ;;  %1165 = vst [vmem:[%s1744_s24 + $0x1a8] sm:$0xff] %v879_v49 }
  0xf3   : > { %1166 = vst [vmem:[%s1744_s24 + $0x1b0] sm:$0xff] %v902_v50 }
  0xf4   : > { %1167 = vst [vmem:[%s1744_s24 + $0x1b8] sm:$0xff] %v925_v51 }
  0xf8   : > { %v945_v52 = vpop.f32.mrf.mxu0  ;;  %v968_v53 = vpop.f32.mrf.mxu1 }
  0xf9   : > { %1136 = vst [vmem:[%s1744_s24 + $0xc0] sm:$0xff] %v945_v52 }
  0xfa   : > { %v991_v54 = vpop.f32.mrf.mxu2  ;;  %v1014_v55 = vpop.f32.mrf.mxu3  ;;  %1137 = vst [vmem:[%s1744_s24 + $0xc8] sm:$0xff] %v968_v53 }
  0xfb   : > { %1138 = vst [vmem:[%s1744_s24 + $0xd0] sm:$0xff] %v991_v54 }
  0xfc   : > { %1139 = vst [vmem:[%s1744_s24 + $0xd8] sm:$0xff] %v1014_v55 }
 0x100   : > { %v948_v56 = vpop.f32.mrf.mxu0  ;;  %v971_v57 = vpop.f32.mrf.mxu1 }
 0x101   : > { %1168 = vst [vmem:[%s1744_s24 + $0x1c0] sm:$0xff] %v948_v56 }
 0x102   : > { %v994_v58 = vpop.f32.mrf.mxu2  ;;  %v1017_v59 = vpop.f32.mrf.mxu3  ;;  %1169 = vst [vmem:[%s1744_s24 + $0x1c8] sm:$0xff] %v971_v57 }
 0x103   : > { %1170 = vst [vmem:[%s1744_s24 + $0x1d0] sm:$0xff] %v994_v58 }
 0x104   : > { %1171 = vst [vmem:[%s1744_s24 + $0x1d8] sm:$0xff] %v1017_v59 }
 0x108   : > { %v1037_v60 = vpop.f32.mrf.mxu0  ;;  %v1060_v61 = vpop.f32.mrf.mxu1 }
 0x109   : > { %1140 = vst [vmem:[%s1744_s24 + $0xe0] sm:$0xff] %v1037_v60 }
 0x10a   : > { %v1083_v62 = vpop.f32.mrf.mxu2  ;;  %v1106_v63 = vpop.f32.mrf.mxu3  ;;  %1141 = vst [vmem:[%s1744_s24 + $0xe8] sm:$0xff] %v1060_v61 }
 0x10b   : > { %1142 = vst [vmem:[%s1744_s24 + $0xf0] sm:$0xff] %v1083_v62 }
 0x10c   : > { %1143 = vst [vmem:[%s1744_s24 + $0xf8] sm:$0xff] %v1106_v63 }
 0x110   : > { %v1040_v0 = vpop.f32.mrf.mxu0  ;;  %v1063_v1 = vpop.f32.mrf.mxu1 }
 0x111   : > { %1172 = vst [vmem:[%s1744_s24 + $0x1e0] sm:$0xff] %v1040_v0 }
 0x112   : > { %v1086_v2 = vpop.f32.mrf.mxu2  ;;  %v1109_v3 = vpop.f32.mrf.mxu3  ;;  %1173 = vst [vmem:[%s1744_s24 + $0x1e8] sm:$0xff] %v1063_v1 }
 0x113   : > { %1174 = vst [vmem:[%s1744_s24 + $0x1f0] sm:$0xff] %v1086_v2 }
 0x114   : > { %1175 = vst [vmem:[%s1744_s24 + $0x1f8] sm:$0xff] %v1109_v3 }
 0x115 PF: > { %s12_s11 = sadd.s32 1, %s1429_s11   ;;  %s1822_s9 = smov %s1425_s10 }
 0x116   : > { %p9_p5 = scmp.ge.s32.totalorder %s12_s11, 4   ;;  %s1823_s10 = smov %s1825_s12 }
 0x118   :  { %11 = sbr.rel (!%p9_p5) target bundleno = 2 (0x2), region = 61 }

// kernel: second_order_scorer_forward.5
= control target key start
LH: loop header
LB: loop body
LE: loop exit
PB: predicated region body
PF: predicated region fallthrough
CT: control target
= control target key end

     0   :  { %s808_s12 = smov 0   ;;  %s810_s13 = smov 0   ;;  %s899_s0 = inlined_call_operand.vmem [shape: f32[2,2,8,32], index: 0, kind: input, shape index: {}]   ;;  %s900_s1 = inlined_call_operand.vmem [shape: f32[2,2,8,32], index: 1, kind: input, shape index: {}]   ;;  %s901_s2 = inlined_call_operand.vmem [shape: f32[2,2,8,32,128], index: 2, kind: input, shape index: {}]   ;;  %s902_s3 = inlined_call_operand.vmem [shape: f32[2,2,8,4,8,8], index: 3, kind: output, shape index: {}]  }
   0x1   :  { %s812_s14 = smov 0   ;;  %s814_s15 = smov 0  }
   0x2   :  { %s816_s16 = smov 0   ;;  %s818_s17 = smov 0  }
   0x3   :  { %s820_s18 = smov 0  }
   0x4 LB: > { %s25_s19 = sadd.s32 1, %s771_s15  ;;  %s28_s20 = sadd.s32 1, %s775_s16  ;;  %s783_s18 = sphi %s820_s18, %s13_s18   ;;  %s779_s17 = sphi %s818_s17, %s908_s17   ;;  %s775_s16 = sphi %s816_s16, %s907_s16   ;;  %s771_s15 = sphi %s814_s15, %s906_s15   ;;  %s767_s14 = sphi %s812_s14, %s905_s14   ;;  %s763_s13 = sphi %s810_s13, %s904_s13   ;;  %s759_s12 = sphi %s808_s12, %s903_s12  }
   0x5   : > { %p26_p0 = scmp.ge.s32.totalorder %s25_s19, 8  ;;  %p633_p1 = scmp.ge.s32.totalorder %s783_s18, 1 }
   0x6   : > { %p202_p2 = scmp.lt.s32.totalorder %s783_s18, 33  ;;  %s32_s21 = sadd.s32 1, %s779_s17 }
   0x7   : > { %s910_s19 = smov (%p26_p0, %s25_s19), 0  ;;  %s912_s20 = smov (!%p26_p0, %s28_s20), %s775_s16 }
   0x8   : > { %p203_p3 = pnand %p633_p1, %p202_p2  ;;  %p30_p4 = scmp.ge.s32.totalorder %s912_s20, 2 }
   0x9   : > { %p258_p6 = scmp.lt.s32.totalorder (!%p203_p3), %s767_s14, 1  ;;  %p260_p7 = scmp.lt.s32.totalorder (!%p203_p3), %s763_s13, 1 }
   0xa   : > { %s914_s20 = smov (%p30_p4, %s912_s20), 0  ;;  %s916_s21 = smov (!%p30_p4, %s32_s21), %s779_s17 }
   0xb   : > { %p34_p5 = scmp.ge.s32.totalorder %s916_s21, 2  ;;  %206 = sbr.rel (%p203_p3) target bundleno = 452 (0x1c4), region = 32 }
   0xc   : > { %p278_p8 = scmp.lt.s32.totalorder (!%p203_p3), %s759_s12, 7 }
   0xd   : > { %s918_s21 = smov (%p34_p5, %s916_s21), 0 }
  0x10   : > { %s920_s14 = smov (!%p258_p6, %s767_s14), 1  ;;  %s922_s13 = smov (!%p260_p7, %s763_s13), 1  ;;  %vm306_vm0 = vcmask 261120   ;;  %v330_v10 = vlaneseq  ;;  %vm459_vm2 = vcmask 64512  }
  0x11   : > { %s924_s12 = smov (!%p278_p8, %s759_s12), 7  ;;  %s639_s22 = sshll.u32 %s922_s13, 5 }
  0x12   : > { %s640_s23 = sshll.u32 %s920_s14, 6  ;;  %s638_s24 = sshll.u32 %s924_s12, 2  ;;  %v331_v11 = vshrl.u32 %v330_v10, 7  ;;  %v333_v12 = vand.u32 127, %v330_v10 }
  0x13   : > { %s634_s25 = sshll.u32 %s920_s14, 1  ;;  %s282_s26 = sadd.s32 %s639_s22, %s638_s24 }
  0x14   : > { %s263_s27 = sadd.s32 %s634_s25, %s922_s13  ;;  %s850_s28 = sadd.s32 %s640_s23, %s282_s26  ;;  %vm334_vm1 = vcmp.le.s32.totalorder %v331_v11, %v333_v12 }
  0x15   : > { %s641_s29 = sshll.u32 %s850_s28, 3  ;;  %s635_s6 = sshll.u32 %s263_s27, 3 }
  0x16   : > { %s286_s5 = scalar_lea.vmem %s901_s2, %s641_s29  ;;  %s273_s9 = scalar_lea.vmem %s900_s1, %s635_s6 }
  0x17   : > { %v305_v0 = vld [vmem:[%s286_s5 + $0x18] sm:$0xff]  ;;  %v304_v1 = vld [vmem:[%s286_s5 + $0x10] sm:$0xff]  ;;  %v301_v2 = vld [vmem:[%s273_s9] sm:$0xff]  ;;  %s265_s12 = scalar_lea.vmem %s899_s0, %s635_s6  ;;  %s785_s13 = smov 32  }
  0x18   : > { %322 = vmatpush.msra.mxu0 %v305_v0  ;;  %v303_v3 = vld [vmem:[%s286_s5 + $0x8] sm:$0xff]  ;;  %647 = vmatpush.xpose.msk.msra.mxu1 %vm306_vm0, %v301_v2  ;;  %v302_v4 = vld [vmem:[%s286_s5] sm:$0xff]  ;;  %s786_s14 = smov 96   ;;  %s787_s22 = smov 64  }
  0x19   : > { %649 = vmatpush.xpose.msk.msra.mxu2 %vm306_vm0, %v301_v2  ;;  %651 = vmatpush.xpose.msk.msra.mxu3 %vm306_vm0, %v301_v2  ;;  %v300_v5 = vld [vmem:[%s265_s12] sm:$0xff]  ;;  %s299_s25 = scalar_lea.vmem %s902_s3, %s641_s29 }
  0x1a   : > { %323 = vmatpush.msra.mxu0 %v304_v1 }
  0x1c   : > { %653 = vmatpush.xpose.msk.msrb.mxu1 %vm306_vm0, %v301_v2  ;;  %324 = vmatpush.msra.mxu0 %v303_v3 }
  0x1e   : > { %325 = vmatpush.msra.mxu0 %v302_v4 }
  0x1f   : > { %646 = vmatmul.msk.f32.vlgmr.msra.gmra.mxu0 %vm306_vm0, %v300_v5 }
  0x9c   : > { %v327_v6 = vpop.f32.mrf.mxu0 }
  0x9d   : > { %412 = vrot.lane.b32.xlu1 %v327_v6, %s785_s13  ;;  %362 = vrot.lane.b32.xlu0 %v327_v6, %s786_s14 }
  0x9e   : > { %648 = vmatmul.msk.f32.vlgmr.msra.gmra.mxu1 %vm306_vm0, %v327_v6 }
  0xa5   : > { %387 = vrot.lane.b32.xlu0 %v327_v6, %s787_s22 }
 0x10f   : > { %v413_v7 = vpop.permute.xlu1 %412  ;;  %v363_v8 = vpop.permute.xlu0 %362 }
 0x110   : > { %650 = vmatmul.msk.f32.vlgmr.msra.gmra.mxu2 %vm306_vm0, %v363_v8  ;;  %654 = vmatmul.msk.f32.vlgmr.msrb.gmra.mxu1 %vm306_vm0, %v413_v7 }
 0x117   : > { %v388_v9 = vpop.permute.xlu0 %387 }
 0x118   : > { %652 = vmatmul.msk.f32.vlgmr.msra.gmra.mxu3 %vm306_vm0, %v388_v9 }
 0x11b   : > { %v358_v13 = vpop.f32.mrf.mxu1 }
 0x11c   : > { %v361_v16 = vsel %vm334_vm1, %v358_v13, 0.0 }
 0x18d   : > { %v433_v17 = vpop.f32.mrf.mxu1 }
 0x18e   : > { %v436_v22 = vsel %vm334_vm1, %v433_v17, 0.0 }
 0x193   : > { %v383_v14 = vpop.f32.mrf.mxu2 }
 0x194   : > { %v386_v15 = vsel %vm334_vm1, %v383_v14, 0.0 }
 0x195   : > { %v437_v18 = vmax.f32 %v361_v16, %v386_v15 }
 0x19b   : > { %v408_v19 = vpop.f32.mrf.mxu3 }
 0x19c   : > { %v411_v20 = vsel %vm334_vm1, %v408_v19, 0.0 }
 0x19d   : > { %v438_v21 = vmax.f32 %v437_v18, %v411_v20 }
 0x19f   : > { %v439_v23 = vmax.f32 %v438_v21, %v436_v22 }
 0x1a1   : > { %v440_v24 = vsub.f32 %v361_v16, %v439_v23  ;;  %v443_v25 = vsub.f32 %v386_v15, %v439_v23  ;;  %v447_v26 = vsub.f32 %v411_v20, %v439_v23  ;;  %v451_v27 = vsub.f32 %v436_v22, %v439_v23 }
 0x1a3   : > { %v441_v28 = vmul.f32 1.442695, %v440_v24  ;;  %v444_v29 = vmul.f32 1.442695, %v443_v25  ;;  %v448_v30 = vmul.f32 1.442695, %v447_v26 }
 0x1a4   : > { %v452_v31 = vmul.f32 1.442695, %v451_v27 }
 0x1a5   : > { %719 = vpow2.f32 %v441_v28 }
 0x1a6   : > { %721 = vpow2.f32 %v444_v29 }
 0x1a7   : > { %723 = vpow2.f32 %v448_v30 }
 0x1a8   : > { %725 = vpow2.f32 %v452_v31 }
 0x1ab   : > { %v720_v32 = vpop.eup %719 }
 0x1ac   : > { %v722_v33 = vpop.eup %721 }
 0x1ad   : > { %v446_v34 = vadd.f32 %v722_v33, %v720_v32  ;;  %v724_v35 = vpop.eup %723 }
 0x1ae   : > { %v726_v37 = vpop.eup %725 }
 0x1af   : > { %v450_v36 = vadd.f32 %v724_v35, %v446_v34 }
 0x1b1   : > { %v454_v38 = vadd.f32 %v726_v37, %v450_v36 }
 0x1b3   : > { %727 = vlog2.f32 %v454_v38 }
 0x1b9   : > { %v728_v39 = vpop.eup %727 }
 0x1ba   : > { %v456_v40 = vmul.f32 0.6931472, %v728_v39 }
 0x1bc   : > { %v457_v41 = vadd.f32 %v456_v40, %v439_v23 }
 0x1be   : > { %v458_v42 = vsub.f32 %v361_v16, %v457_v41  ;;  %v461_v43 = vsub.f32 %v386_v15, %v457_v41  ;;  %v464_v44 = vsub.f32 %v411_v20, %v457_v41  ;;  %v467_v45 = vsub.f32 %v436_v22, %v457_v41 }
 0x1c0   : > { %460 = vst.msk [vmem:[%s299_s25] sm:$0xff] %vm459_vm2, %v458_v42 }
 0x1c1   : > { %655 = vst.msk [vmem:[%s299_s25 + $0x8] sm:$0xff] %vm459_vm2, %v461_v43 }
 0x1c2   : > { %656 = vst.msk [vmem:[%s299_s25 + $0x10] sm:$0xff] %vm459_vm2, %v464_v44 }
 0x1c3   : > { %657 = vst.msk [vmem:[%s299_s25 + $0x18] sm:$0xff] %vm459_vm2, %v467_v45 }
 0x1c4 PF: > { %s13_s18 = sadd.s32 1, %s783_s18   ;;  %s903_s12 = smov %s771_s15 }
 0x1c5   : > { %p10_p9 = scmp.ge.s32.totalorder %s13_s18, 34   ;;  %s904_s13 = smov %s775_s16 }
 0x1c6   : > { %s905_s14 = smov %s779_s17  ;;  %s906_s15 = smov %s910_s19 }
 0x1c7   : > { %s907_s16 = smov %s914_s20  ;;  %s908_s17 = smov %s918_s21 }
 0x1c8   :  { %12 = sbr.rel (!%p10_p9) target bundleno = 4 (0x4), region = 71 }

</bundles_post_ra>
